<compile_context>
chip_gen: v7x
topology: tpu7x:2x2x1
jax: 0.10.0
libtpu: 0.0.40
codegen_flags: <defaults>
</compile_context>

<pallas_src>
import jax
import jax.numpy as jnp
from jax.experimental import pallas as pl
from jax.experimental.pallas import tpu as pltpu

_FEAT = 128          # per-branch feature width
_CLASSES = 2
_OUT_PAD = 128       # lane-dense padded output width (first _CLASSES cols valid)
_TILE_B_MAX = 512    # f32 batch tile (multiple of 8); ~1.5 MiB of double-buffered
                     # input tiles -> safe well under v7x's 64 MiB VMEM


def _round_up(x, m):
    return (x + m - 1) // m * m


def _concat_fc_kernel(m_ref, s_ref, w_ref,
                      wm_ref, ws_ref, ww_ref, b_ref,
                      out_ref):
    # Folded fc1->fc2->fc3 applied to the implicit concat of the three
    # 128-d branch features:
    #   cat([m, s, w]) @ W_fold == m @ Wf[:128] + s @ Wf[128:256] + w @ Wf[256:]
    out_ref[...] = (
        jnp.dot(m_ref[...], wm_ref[...], preferred_element_type=jnp.float32)
        + jnp.dot(s_ref[...], ws_ref[...], preferred_element_type=jnp.float32)
        + jnp.dot(w_ref[...], ww_ref[...], preferred_element_type=jnp.float32)
        + b_ref[...]
    ).astype(out_ref.dtype)


def fold_params(params):
    """One-time algebraic fold of the activation-free Linear chain.

    Valid only because the PyTorch forward has no ReLU/BatchNorm between
    concat_fc1 / concat_fc2 / concat_fc3.  Weights are [in, out] (transposed
    vs. PyTorch), so the fold is a plain right-to-left matmul chain.
    """
    w23 = params["w2"] @ params["w3"]                                   # [128, 2]
    w_fold = params["w1"] @ w23                                         # [384, 2]
    b_fold = params["b1"] @ w23 + params["b2"] @ params["w3"] + params["b3"]  # [2]
    # Pad the tiny class dim up to a full 128-wide lane so output stores are
    # lane-dense (the MXU N dim is a full tile either way).
    w_fold = jnp.pad(w_fold, ((0, 0), (0, _OUT_PAD - _CLASSES)))
    b_fold = jnp.pad(b_fold, (0, _OUT_PAD - _CLASSES))
    return {
        "wm": w_fold[0 * _FEAT:1 * _FEAT],   # [128, 128]
        "ws": w_fold[1 * _FEAT:2 * _FEAT],   # [128, 128]
        "ww": w_fold[2 * _FEAT:3 * _FEAT],   # [128, 128]
        "b":  b_fold.reshape(1, _OUT_PAD),   # [1, 128]
    }


def concat_fc_forward(mfcc_feat, scalo_feat, wave_feat, folded):
    """Fused concat + (folded) fc1/fc2/fc3.  Inputs: three [B, 128] f32 features."""
    B = mfcc_feat.shape[0]
    tile_b = min(_TILE_B_MAX, _round_up(B, 8))
    b_pad = _round_up(B, tile_b)
    if b_pad != B:
        pad = ((0, b_pad - B), (0, 0))
        mfcc_feat = jnp.pad(mfcc_feat, pad)
        scalo_feat = jnp.pad(scalo_feat, pad)
        wave_feat = jnp.pad(wave_feat, pad)

    feat_spec = pl.BlockSpec((tile_b, _FEAT), lambda i: (i, 0))
    w_spec = pl.BlockSpec((_FEAT, _OUT_PAD), lambda i: (0, 0))     # VMEM-resident
    b_spec = pl.BlockSpec((1, _OUT_PAD), lambda i: (0, 0))         # VMEM-resident
    out_spec = pl.BlockSpec((tile_b, _OUT_PAD), lambda i: (i, 0))

    flops = 2 * b_pad * (3 * _FEAT) * _OUT_PAD
    bytes_accessed = 4 * (b_pad * 3 * _FEAT            # feature inputs
                          + 3 * _FEAT * _OUT_PAD       # folded weights
                          + _OUT_PAD                   # bias
                          + b_pad * _OUT_PAD)          # output

    out_padded = pl.pallas_call(
        _concat_fc_kernel,
        out_shape=jax.ShapeDtypeStruct((b_pad, _OUT_PAD), jnp.float32),
        grid_spec=pltpu.PrefetchScalarGridSpec(
            num_scalar_prefetch=0,
            grid=(b_pad // tile_b,),
            in_specs=[feat_spec, feat_spec, feat_spec,
                      w_spec, w_spec, w_spec, b_spec],
            out_specs=out_spec,
        ),
        compiler_params=pltpu.CompilerParams(
            dimension_semantics=("parallel",),        # free ~2x on v7x megacore
            vmem_limit_bytes=32 * 1024 * 1024,        # safe on v7x's 64 MiB VMEM
        ),
        cost_estimate=pl.CostEstimate(
            flops=flops, transcendentals=0, bytes_accessed=bytes_accessed),
    )(mfcc_feat, scalo_feat, wave_feat,
      folded["wm"], folded["ws"], folded["ww"], folded["b"])

    return out_padded[:B, :_CLASSES]


def init_params(key):
    """Deterministic init mimicking nn.Linear: U(-1/sqrt(fan_in), 1/sqrt(fan_in)).
    Weights are stored as [in_features, out_features]."""
    dims = [(3 * _FEAT, 128), (128, 64), (64, _CLASSES)]
    params = {}
    for i, (fan_in, fan_out) in enumerate(dims, start=1):
        key, kw, kb = jax.random.split(key, 3)
        bound = 1.0 / jnp.sqrt(jnp.float32(fan_in))
        params[f"w{i}"] = jax.random.uniform(
            kw, (fan_in, fan_out), jnp.float32, -bound, bound)
        params[f"b{i}"] = jax.random.uniform(
            kb, (fan_out,), jnp.float32, -bound, bound)
    return params


def reference_forward(mfcc_feat, scalo_feat, wave_feat, params):
    """Plain-JAX reference (unfolded; matches the PyTorch forward semantics)."""
    x = jnp.concatenate([mfcc_feat, scalo_feat, wave_feat], axis=1)   # [B, 384]
    x = x @ params["w1"] + params["b1"]
    x = x @ params["w2"] + params["b2"]
    x = x @ params["w3"] + params["b3"]
    return x


if __name__ == "__main__":
    key = jax.random.PRNGKey(0)
    kp, km, ks, kw = jax.random.split(key, 4)

    B = 8  # small batch for the smoke test
    params = init_params(kp)
    folded = jax.tree.map(jax.block_until_ready, fold_params(params))  # hoisted out of hot path

    mfcc_feat = jax.random.normal(km, (B, _FEAT), jnp.float32)
    scalo_feat = jax.random.normal(ks, (B, _FEAT), jnp.float32)
    wave_feat = jax.random.normal(kw, (B, _FEAT), jnp.float32)

    fwd = jax.jit(concat_fc_forward)
    out = fwd(mfcc_feat, scalo_feat, wave_feat, folded)
    out = jax.block_until_ready(out)

    ref = reference_forward(mfcc_feat, scalo_feat, wave_feat, params)
    assert out.shape == (B, _CLASSES)
    assert jnp.allclose(out, ref, atol=1e-4, rtol=1e-4), "mismatch vs reference"

    print("KERNEL_OK")
</pallas_src>

<mosaic_0001>
module attributes {stable_mosaic.version = 11 : i64} {
  func.func @_concat_fc_kernel(%arg0: i32, %arg1: memref<8x128xf32, #tpu.memory_space<vmem>>, %arg2: memref<8x128xf32, #tpu.memory_space<vmem>>, %arg3: memref<8x128xf32, #tpu.memory_space<vmem>>, %arg4: memref<128x128xf32, #tpu.memory_space<vmem>>, %arg5: memref<128x128xf32, #tpu.memory_space<vmem>>, %arg6: memref<128x128xf32, #tpu.memory_space<vmem>>, %arg7: memref<1x128xf32, #tpu.memory_space<vmem>>, %arg8: memref<8x128xf32, #tpu.memory_space<vmem>>) attributes {dimension_semantics = [#tpu.dimension_semantics<parallel>], iteration_bounds = array<i64: 1>, scalar_prefetch = 0 : i64, scratch_operands = 0 : i64, tpu.core_type = #tpu.core_type<tc>, window_params = [{transform_indices = @transform_0, window_bounds = array<i64: 8, 128>}, {transform_indices = @transform_1, window_bounds = array<i64: 8, 128>}, {transform_indices = @transform_2, window_bounds = array<i64: 8, 128>}, {pipeline_mode = #tpu.pipeline_mode<synchronous>, transform_indices = @transform_3, window_bounds = array<i64: 128, 128>}, {pipeline_mode = #tpu.pipeline_mode<synchronous>, transform_indices = @transform_4, window_bounds = array<i64: 128, 128>}, {pipeline_mode = #tpu.pipeline_mode<synchronous>, transform_indices = @transform_5, window_bounds = array<i64: 128, 128>}, {pipeline_mode = #tpu.pipeline_mode<synchronous>, transform_indices = @transform_6, window_bounds = array<i64: 1, 128>}, {transform_indices = @transform_7, window_bounds = array<i64: 8, 128>}]} {
    %c0 = arith.constant 0 : index
    %c0_0 = arith.constant 0 : index
    %0 = vector.load %arg1[%c0, %c0_0] : memref<8x128xf32, #tpu.memory_space<vmem>>, vector<8x128xf32>
    %c0_1 = arith.constant 0 : index
    %c0_2 = arith.constant 0 : index
    %1 = vector.load %arg4[%c0_1, %c0_2] : memref<128x128xf32, #tpu.memory_space<vmem>>, vector<128x128xf32>
    %cst = arith.constant dense<0.000000e+00> : vector<8x128xf32>
    %2 = tpu.matmul %0, %1, %cst {dimension_numbers = #tpu.dot_dimension_numbers<[1], [0], [0], [1], [0, 0, 1, 1], [], []>} : vector<8x128xf32>, vector<128x128xf32>, vector<8x128xf32> -> vector<8x128xf32>
    %c0_3 = arith.constant 0 : index
    %c0_4 = arith.constant 0 : index
    %3 = vector.load %arg2[%c0_3, %c0_4] : memref<8x128xf32, #tpu.memory_space<vmem>>, vector<8x128xf32>
    %c0_5 = arith.constant 0 : index
    %c0_6 = arith.constant 0 : index
    %4 = vector.load %arg5[%c0_5, %c0_6] : memref<128x128xf32, #tpu.memory_space<vmem>>, vector<128x128xf32>
    %cst_7 = arith.constant dense<0.000000e+00> : vector<8x128xf32>
    %5 = tpu.matmul %3, %4, %cst_7 {dimension_numbers = #tpu.dot_dimension_numbers<[1], [0], [0], [1], [0, 0, 1, 1], [], []>} : vector<8x128xf32>, vector<128x128xf32>, vector<8x128xf32> -> vector<8x128xf32>
    %6 = arith.addf %2, %5 : vector<8x128xf32>
    %c0_8 = arith.constant 0 : index
    %c0_9 = arith.constant 0 : index
    %7 = vector.load %arg3[%c0_8, %c0_9] : memref<8x128xf32, #tpu.memory_space<vmem>>, vector<8x128xf32>
    %c0_10 = arith.constant 0 : index
    %c0_11 = arith.constant 0 : index
    %8 = vector.load %arg6[%c0_10, %c0_11] : memref<128x128xf32, #tpu.memory_space<vmem>>, vector<128x128xf32>
    %cst_12 = arith.constant dense<0.000000e+00> : vector<8x128xf32>
    %9 = tpu.matmul %7, %8, %cst_12 {dimension_numbers = #tpu.dot_dimension_numbers<[1], [0], [0], [1], [0, 0, 1, 1], [], []>} : vector<8x128xf32>, vector<128x128xf32>, vector<8x128xf32> -> vector<8x128xf32>
    %10 = arith.addf %6, %9 : vector<8x128xf32>
    %c0_13 = arith.constant 0 : index
    %c0_14 = arith.constant 0 : index
    %11 = vector.load %arg7[%c0_13, %c0_14] : memref<1x128xf32, #tpu.memory_space<vmem>>, vector<1x128xf32>
    %12 = vector.broadcast %11 : vector<1x128xf32> to vector<8x128xf32>
    %13 = arith.addf %10, %12 : vector<8x128xf32>
    %c0_15 = arith.constant 0 : index
    %c0_16 = arith.constant 0 : index
    %14 = vector.load %arg8[%c0_15, %c0_16] : memref<8x128xf32, #tpu.memory_space<vmem>>, vector<8x128xf32>
    tpu.vector_store %arg8[%c0_15, %c0_16], %13 {strides = array<i32>} : memref<8x128xf32, #tpu.memory_space<vmem>>, vector<8x128xf32>,
    return
  }
  func.func @transform_0(%arg0: i32) -> (i32, i32) {
    %c0_i32 = arith.constant 0 : i32
    %c0_i32_0 = arith.constant 0 : i32
    return %arg0, %c0_i32 : i32, i32
  }
  func.func @transform_1(%arg0: i32) -> (i32, i32) {
    %c0_i32 = arith.constant 0 : i32
    %c0_i32_0 = arith.constant 0 : i32
    return %arg0, %c0_i32 : i32, i32
  }
  func.func @transform_2(%arg0: i32) -> (i32, i32) {
    %c0_i32 = arith.constant 0 : i32
    %c0_i32_0 = arith.constant 0 : i32
    return %arg0, %c0_i32 : i32, i32
  }
  func.func @transform_3(%arg0: i32) -> (i32, i32) {
    %c0_i32 = arith.constant 0 : i32
    %c0_i32_0 = arith.constant 0 : i32
    %c0_i32_1 = arith.constant 0 : i32
    return %c0_i32, %c0_i32_0 : i32, i32
  }
  func.func @transform_4(%arg0: i32) -> (i32, i32) {
    %c0_i32 = arith.constant 0 : i32
    %c0_i32_0 = arith.constant 0 : i32
    %c0_i32_1 = arith.constant 0 : i32
    return %c0_i32, %c0_i32_0 : i32, i32
  }
  func.func @transform_5(%arg0: i32) -> (i32, i32) {
    %c0_i32 = arith.constant 0 : i32
    %c0_i32_0 = arith.constant 0 : i32
    %c0_i32_1 = arith.constant 0 : i32
    return %c0_i32, %c0_i32_0 : i32, i32
  }
  func.func @transform_6(%arg0: i32) -> (i32, i32) {
    %c0_i32 = arith.constant 0 : i32
    %c0_i32_0 = arith.constant 0 : i32
    %c0_i32_1 = arith.constant 0 : i32
    return %c0_i32, %c0_i32_0 : i32, i32
  }
  func.func @transform_7(%arg0: i32) -> (i32, i32) {
    %c0_i32 = arith.constant 0 : i32
    %c0_i32_0 = arith.constant 0 : i32
    return %arg0, %c0_i32 : i32, i32
  }
}

</mosaic_0001>

<bundles_post_ra>
// kernel: concat_fc_forward.1
= control target key start
LH: loop header
LB: loop body
LE: loop exit
PB: predicated region body
PF: predicated region fallthrough
CT: control target
= control target key end

     0   :  { %12 = vsyncpa [#allocation3], 0  ;;  %s943_s0 = inlined_call_operand.hbm [shape: f32[8,128], index: 0, kind: input, shape index: {}]   ;;  %s944_s1 = inlined_call_operand.hbm [shape: f32[8,128], index: 1, kind: input, shape index: {}]   ;;  %s945_s2 = inlined_call_operand.hbm [shape: f32[8,128], index: 2, kind: input, shape index: {}]   ;;  %s946_s3 = inlined_call_operand.hbm [shape: f32[128,128], index: 3, kind: input, shape index: {}]   ;;  %s947_s4 = inlined_call_operand.hbm [shape: f32[128,128], index: 4, kind: input, shape index: {}]   ;;  %s948_s5 = inlined_call_operand.hbm [shape: f32[128,128], index: 5, kind: input, shape index: {}]   ;;  %s949_s6 = inlined_call_operand.vmem [shape: f32[1,128], index: 6, kind: input, shape index: {}]   ;;  %s950_s7 = inlined_call_operand.vmem [shape: f32[8,128], index: 7, kind: output, shape index: {}]  }
   0x1   :  { %13 = vsyncpa [#allocation5], 0 }
   0x2   :  { %14 = vsyncpa [#allocation8], 0 }
   0x3   :  { %15 = vsyncpa [#allocation11], 0  ;;  %s761_s24 = smov [#allocation4]   ;;  %s762_s26 = smov [#allocation7]  }
   0x4   :  { %s32_s25 = sshll.u32 %s761_s24, 4  ;;  %s51_s27 = sshll.u32 %s762_s26, 4  ;;  %s33_s25 = int_to_ptr.vmem [resolvable:$true] %s32_s25  ;;  %s812_s27 = int_to_ptr.vmem [resolvable:$true] %s51_s27 }
   0x5   :  { %s621_s30 = scalar_lea.hbm %s944_s1, 128 }
   0x6   :  { %p622_p0 = scmp.ne.s32.totalorder %s944_s1, %s621_s30  ;;  %p625_p1 = scmp.lt.u32.totalorder %s621_s30, %s944_s1 }
   0x8   :  { %p627_p2 = pnand %p625_p1, %p622_p0 }
   0xa   :  { %630 = shalt.err (!%p627_p2)
}
   0xb   :  { %s631_s12 = scalar_lea.vmem %s33_s25, 128  ;;  %p636_p4 = scmp.lt.s32.totalorder %s33_s25, %s33_s25 }
   0xc   :  { %p632_p3 = scmp.ne.s32.totalorder %s33_s25, %s631_s12  ;;  %p637_p5 = scmp.lt.s32.totalorder %s631_s12, %s631_s12 }
   0xe   :  { %p638_p6 = por %p637_p5, %p636_p4 }
  0x10   :  { %p639_p7 = pnand %p638_p6, %p632_p3 }
  0x12   :  { %642 = shalt.err (!%p639_p7)
}
  0x13   :  { %35 = dma.hbm_to_vmem [thread:$0]  %s944_s1, 128, %s33_s25, [#allocation5]  }
  0x14   :  { %s643_s17 = scalar_lea.hbm %s946_s3, 2048 }
  0x15   :  { %p644_p8 = scmp.ne.s32.totalorder %s946_s3, %s643_s17  ;;  %p647_p9 = scmp.lt.u32.totalorder %s643_s17, %s946_s3 }
  0x17   :  { %p649_p10 = pnand %p647_p9, %p644_p8 }
  0x19   :  { %652 = shalt.err (!%p649_p10)
}
  0x1a   :  { %s653_s22 = scalar_lea.vmem %s812_s27, 2048  ;;  %p658_p12 = scmp.lt.s32.totalorder %s812_s27, %s812_s27 }
  0x1b   :  { %p654_p11 = scmp.ne.s32.totalorder %s812_s27, %s653_s22  ;;  %p659_p13 = scmp.lt.s32.totalorder %s653_s22, %s653_s22 }
  0x1d   :  { %p660_p0 = por %p659_p13, %p658_p12 }
  0x1f   :  { %p661_p1 = pnand %p660_p0, %p654_p11 }
  0x21   :  { %664 = shalt.err (!%p661_p1)
}
  0x22   :  { %s763_s1 = smov 128   ;;  %s764_s23 = smov 8  }
  0x23   :  { %57 = dma.hbm_to_vmem [thread:$0]  %s946_s3, 2048, %s812_s27, [#allocation8], %s763_s1, %s763_s1, %s764_s23  }
  0x24   :  { %s765_s26 = smov [#allocation2]   ;;  %s766_s29 = smov [#allocation6]  }
  0x25   :  { %s22_s28 = sshll.u32 %s765_s26, 4  ;;  %s42_s30 = sshll.u32 %s766_s29, 4  ;;  %s23_s28 = int_to_ptr.vmem [resolvable:$true] %s22_s28  ;;  %s43_s30 = int_to_ptr.vmem [resolvable:$true] %s42_s30 }
  0x26   :  { %s665_s10 = scalar_lea.hbm %s943_s0, 128 }
  0x27   :  { %p666_p2 = scmp.ne.s32.totalorder %s943_s0, %s665_s10  ;;  %p669_p3 = scmp.lt.u32.totalorder %s665_s10, %s943_s0 }
  0x29   :  { %p671_p4 = pnand %p669_p3, %p666_p2 }
  0x2b   :  { %674 = shalt.err (!%p671_p4)
}
  0x2c   :  { %s675_s3 = scalar_lea.vmem %s23_s28, 128  ;;  %p680_p6 = scmp.lt.s32.totalorder %s23_s28, %s23_s28 }
  0x2d   :  { %p676_p5 = scmp.ne.s32.totalorder %s23_s28, %s675_s3  ;;  %p681_p7 = scmp.lt.s32.totalorder %s675_s3, %s675_s3 }
  0x2f   :  { %p682_p8 = por %p681_p7, %p680_p6 }
  0x31   :  { %p683_p9 = pnand %p682_p8, %p676_p5 }
  0x33   :  { %686 = shalt.err (!%p683_p9)
}
  0x34   :  { %25 = dma.hbm_to_vmem [thread:$0]  %s943_s0, 128, %s23_s28, [#allocation3]  }
  0x35   :  { %s687_s18 = scalar_lea.hbm %s945_s2, 128 }
  0x36   :  { %p688_p10 = scmp.ne.s32.totalorder %s945_s2, %s687_s18  ;;  %p691_p11 = scmp.lt.u32.totalorder %s687_s18, %s945_s2 }
  0x38   :  { %p693_p12 = pnand %p691_p11, %p688_p10 }
  0x3a   :  { %696 = shalt.err (!%p693_p12)
}
  0x3b   :  { %s697_s24 = scalar_lea.vmem %s43_s30, 128  ;;  %p702_p0 = scmp.lt.s32.totalorder %s43_s30, %s43_s30 }
  0x3c   :  { %p698_p13 = scmp.ne.s32.totalorder %s43_s30, %s697_s24  ;;  %p703_p1 = scmp.lt.s32.totalorder %s697_s24, %s697_s24 }
  0x3e   :  { %p704_p2 = por %p703_p1, %p702_p0 }
  0x40   :  { %p705_p3 = pnand %p704_p2, %p698_p13 }
  0x42   :  { %708 = shalt.err (!%p705_p3)
}
  0x43   :  { %45 = dma.hbm_to_vmem [thread:$0]  %s945_s2, 128, %s43_s30, [#allocation5]  }
  0x44   :  { %s767_s26 = smov [#allocation9]   ;;  %s768_s29 = smov [#allocation10]  }
  0x45   :  { %s63_s28 = sshll.u32 %s767_s26, 4  ;;  %s75_s8 = sshll.u32 %s768_s29, 4  ;;  %s64_s28 = int_to_ptr.vmem [resolvable:$true] %s63_s28  ;;  %s870_s8 = int_to_ptr.vmem [resolvable:$true] %s75_s8 }
  0x46   :  { %s709_s11 = scalar_lea.hbm %s947_s4, 2048 }
  0x47   :  { %p710_p4 = scmp.ne.s32.totalorder %s947_s4, %s709_s11  ;;  %p713_p5 = scmp.lt.u32.totalorder %s709_s11, %s947_s4 }
  0x49   :  { %p715_p6 = pnand %p713_p5, %p710_p4 }
  0x4b   :  { %718 = shalt.err (!%p715_p6)
}
  0x4c   :  { %s719_s2 = scalar_lea.vmem %s64_s28, 2048  ;;  %p724_p8 = scmp.lt.s32.totalorder %s64_s28, %s64_s28 }
  0x4d   :  { %p720_p7 = scmp.ne.s32.totalorder %s64_s28, %s719_s2  ;;  %p725_p9 = scmp.lt.s32.totalorder %s719_s2, %s719_s2 }
  0x4f   :  { %p726_p10 = por %p725_p9, %p724_p8 }
  0x51   :  { %p727_p11 = pnand %p726_p10, %p720_p7 }
  0x53   :  { %730 = shalt.err (!%p727_p11)
}
  0x54   :  { %69 = dma.hbm_to_vmem [thread:$0]  %s947_s4, 2048, %s64_s28, [#allocation8], %s763_s1, %s763_s1, %s764_s23  }
  0x55   :  { %s731_s17 = scalar_lea.hbm %s948_s5, 2048 }
  0x56   :  { %p732_p12 = scmp.ne.s32.totalorder %s948_s5, %s731_s17  ;;  %p735_p13 = scmp.lt.u32.totalorder %s731_s17, %s948_s5 }
  0x58   :  { %p737_p0 = pnand %p735_p13, %p732_p12 }
  0x5a   :  { %740 = shalt.err (!%p737_p0)
}
  0x5b   :  { %s741_s22 = scalar_lea.vmem %s870_s8, 2048  ;;  %p746_p2 = scmp.lt.s32.totalorder %s870_s8, %s870_s8 }
  0x5c   :  { %p742_p1 = scmp.ne.s32.totalorder %s870_s8, %s741_s22  ;;  %p747_p3 = scmp.lt.s32.totalorder %s741_s22, %s741_s22 }
  0x5e   :  { %p748_p4 = por %p747_p3, %p746_p2 }
  0x60   :  { %p749_p5 = pnand %p748_p4, %p742_p1 }
  0x62   :  { %752 = shalt.err (!%p749_p5)
}
  0x63   :  { %81 = dma.hbm_to_vmem [thread:$0]  %s948_s5, 2048, %s870_s8, [#allocation11], %s763_s1, %s763_s1, %s764_s23  }
  0x64   :  { %753 = dma.done.wait [#allocation3], 128  }
  0x65   :  { %754 = vsyncadd [#allocation3], 4294967168 }
  0x66   :  { %755 = dma.done.wait [#allocation5], 256  }
  0x67   :  { %756 = vsyncadd [#allocation5], 4294967040 }
  0x68   :  { %757 = dma.done.wait [#allocation8], 4096  }
  0x69   :  { %758 = vsyncadd [#allocation8], 4294963200 }
  0x6a   :  { %759 = dma.done.wait [#allocation11], 2048  }
  0x6b   :  { %760 = vsyncadd [#allocation11], 4294965248  ;;  %v769_v0 = vmov 0.0|0.0   ;;  %vm770_vm0 = vmmov 0   ;;  %v771_v1 = vmov 0.0   ;;  %v120_v2 = vld [vmem:[#allocation9] sm:$0xff] }
  0x6c   :  { %538 = vmatprep.subr.bf16.mxu0 %v769_v0  ;;  %562 = vmatprep.subr.bf16.mxu1 %v769_v0  ;;  %v121_v3 = vld [vmem:[#allocation9 + $0x8] sm:$0xff]  ;;  %v103_v4 = vld [vmem:[#allocation7] sm:$0xff]  ;;  %v122_v7 = vld [vmem:[#allocation9 + $0x10] sm:$0xff] }
  0x6d   :  { %465 = vmatprep.mubr.msk.f32.mxu0 %vm770_vm0, %v771_v1  ;;  %500 = vmatprep.mubr.msk.f32.mxu1 %vm770_vm0, %v771_v1  ;;  %v539_v5 = vpack.c.bf16 %v121_v3, %v120_v2  ;;  %v104_v6 = vld [vmem:[#allocation7 + $0x8] sm:$0xff]  ;;  %v123_v8 = vld [vmem:[#allocation9 + $0x18] sm:$0xff]  ;;  %v105_v10 = vld [vmem:[#allocation7 + $0x10] sm:$0xff] }
  0x6e   :  { %v563_v9 = vpack.c.bf16 %v104_v6, %v103_v4  ;;  %v106_v11 = vld [vmem:[#allocation7 + $0x18] sm:$0xff]  ;;  %v542_v12 = vpack.c.bf16 %v123_v8, %v122_v7  ;;  %v124_v14 = vld [vmem:[#allocation9 + $0x20] sm:$0xff]  ;;  %v125_v15 = vld [vmem:[#allocation9 + $0x28] sm:$0xff] }
  0x6f   :  { %540 = vmatpush3.bf16.msra.mxu0 %v539_v5  ;;  %v566_v13 = vpack.c.bf16 %v106_v11, %v105_v10  ;;  %v107_v16 = vld [vmem:[#allocation7 + $0x20] sm:$0xff]  ;;  %v108_v17 = vld [vmem:[#allocation7 + $0x28] sm:$0xff]  ;;  %v545_v18 = vpack.c.bf16 %v125_v15, %v124_v14  ;;  %v126_v20 = vld [vmem:[#allocation9 + $0x30] sm:$0xff] }
  0x70   :  { %564 = vmatpush3.bf16.msra.mxu1 %v563_v9  ;;  %541 = vmatprep.subr.bf16.mxu0 %v769_v0  ;;  %v569_v19 = vpack.c.bf16 %v108_v17, %v107_v16  ;;  %v127_v21 = vld [vmem:[#allocation9 + $0x38] sm:$0xff]  ;;  %v109_v22 = vld [vmem:[#allocation7 + $0x30] sm:$0xff]  ;;  %v128_v26 = vld [vmem:[#allocation9 + $0x40] sm:$0xff] }
  0x71   :  { %565 = vmatprep.subr.bf16.mxu1 %v769_v0  ;;  %v110_v23 = vld [vmem:[#allocation7 + $0x38] sm:$0xff]  ;;  %v548_v24 = vpack.c.bf16 %v127_v21, %v126_v20  ;;  %v129_v27 = vld [vmem:[#allocation9 + $0x48] sm:$0xff]  ;;  %v111_v28 = vld [vmem:[#allocation7 + $0x40] sm:$0xff] }
  0x72   :  { %v572_v25 = vpack.c.bf16 %v110_v23, %v109_v22  ;;  %v112_v29 = vld [vmem:[#allocation7 + $0x48] sm:$0xff]  ;;  %v551_v30 = vpack.c.bf16 %v129_v27, %v128_v26  ;;  %v130_v32 = vld [vmem:[#allocation9 + $0x50] sm:$0xff]  ;;  %v131_v33 = vld [vmem:[#allocation9 + $0x58] sm:$0xff] }
  0x73   :  { %543 = vmatpush3.bf16.msra.mxu0 %v542_v12  ;;  %v575_v31 = vpack.c.bf16 %v112_v29, %v111_v28  ;;  %v113_v34 = vld [vmem:[#allocation7 + $0x50] sm:$0xff]  ;;  %v114_v35 = vld [vmem:[#allocation7 + $0x58] sm:$0xff]  ;;  %v554_v36 = vpack.c.bf16 %v131_v33, %v130_v32  ;;  %v132_v38 = vld [vmem:[#allocation9 + $0x60] sm:$0xff] }
  0x74   :  { %567 = vmatpush3.bf16.msra.mxu1 %v566_v13  ;;  %544 = vmatprep.subr.bf16.mxu0 %v769_v0  ;;  %v578_v37 = vpack.c.bf16 %v114_v35, %v113_v34  ;;  %v133_v39 = vld [vmem:[#allocation9 + $0x68] sm:$0xff]  ;;  %v115_v40 = vld [vmem:[#allocation7 + $0x60] sm:$0xff]  ;;  %v134_v44 = vld [vmem:[#allocation9 + $0x70] sm:$0xff] }
  0x75   :  { %568 = vmatprep.subr.bf16.mxu1 %v769_v0  ;;  %v116_v41 = vld [vmem:[#allocation7 + $0x68] sm:$0xff]  ;;  %v557_v42 = vpack.c.bf16 %v133_v39, %v132_v38  ;;  %v135_v45 = vld [vmem:[#allocation9 + $0x78] sm:$0xff]  ;;  %v117_v46 = vld [vmem:[#allocation7 + $0x70] sm:$0xff] }
  0x76   :  { %v581_v43 = vpack.c.bf16 %v116_v41, %v115_v40  ;;  %v118_v47 = vld [vmem:[#allocation7 + $0x78] sm:$0xff]  ;;  %v560_v48 = vpack.c.bf16 %v135_v45, %v134_v44  ;;  %v277_v50 = vld [vmem:[#allocation10] sm:$0xff]  ;;  %v278_v51 = vld [vmem:[#allocation10 + $0x8] sm:$0xff] }
  0x77   :  { %546 = vmatpush3.bf16.msra.mxu0 %v545_v18  ;;  %v584_v49 = vpack.c.bf16 %v118_v47, %v117_v46  ;;  %v119_v52 = vld [vmem:[#allocation4] sm:$0xff]  ;;  %v587_v53 = vpack.c.bf16 %v278_v51, %v277_v50  ;;  %v102_v54 = vld [vmem:[#allocation2] sm:$0xff]  ;;  %v280_v56 = vld [vmem:[#allocation10 + $0x18] sm:$0xff] }
  0x78   :  { %570 = vmatpush3.bf16.msra.mxu1 %v569_v19  ;;  %547 = vmatprep.subr.bf16.mxu0 %v769_v0  ;;  %v279_v55 = vld [vmem:[#allocation10 + $0x10] sm:$0xff]  ;;  %v281_v58 = vld [vmem:[#allocation10 + $0x20] sm:$0xff]  ;;  %v282_v59 = vld [vmem:[#allocation10 + $0x28] sm:$0xff] }
  0x79   :  { %571 = vmatprep.subr.bf16.mxu1 %v769_v0  ;;  %v590_v57 = vpack.c.bf16 %v280_v56, %v279_v55  ;;  %v593_v60 = vpack.c.bf16 %v282_v59, %v281_v58  ;;  %v283_v61 = vld [vmem:[#allocation10 + $0x30] sm:$0xff]  ;;  %v284_v62 = vld [vmem:[#allocation10 + $0x38] sm:$0xff]  ;;  %v285_v2 = vld [vmem:[#allocation10 + $0x40] sm:$0xff] }
  0x7a   :  { %v596_v63 = vpack.c.bf16 %v284_v62, %v283_v61  ;;  %v286_v3 = vld [vmem:[#allocation10 + $0x48] sm:$0xff]  ;;  %v287_v5 = vld [vmem:[#allocation10 + $0x50] sm:$0xff]  ;;  %v288_v6 = vld [vmem:[#allocation10 + $0x58] sm:$0xff] }
  0x7b   :  { %549 = vmatpush3.bf16.msra.mxu0 %v548_v24  ;;  %v599_v4 = vpack.c.bf16 %v286_v3, %v285_v2  ;;  %v289_v7 = vld [vmem:[#allocation10 + $0x60] sm:$0xff]  ;;  %v290_v8 = vld [vmem:[#allocation10 + $0x68] sm:$0xff]  ;;  %v291_v10 = vld [vmem:[#allocation10 + $0x70] sm:$0xff] }
  0x7c   :  { %573 = vmatpush3.bf16.msra.mxu1 %v572_v25  ;;  %550 = vmatprep.subr.bf16.mxu0 %v769_v0  ;;  %v605_v9 = vpack.c.bf16 %v290_v8, %v289_v7  ;;  %v292_v11 = vld [vmem:[#allocation10 + $0x78] sm:$0xff]  ;;  %v381_v20 = vld [vmem:[%s949_s6] ss:$0 sm:$0xff] }
  0x7d   :  { %574 = vmatprep.subr.bf16.mxu1 %v769_v0  ;;  %v608_v12 = vpack.c.bf16 %v292_v11, %v291_v10  ;;  %v276_v13 = vld [vmem:[#allocation6] sm:$0xff] }
  0x7f   :  { %552 = vmatpush3.bf16.msra.mxu0 %v551_v30 }
  0x80   :  { %576 = vmatpush3.bf16.msra.mxu1 %v575_v31  ;;  %553 = vmatprep.subr.bf16.mxu0 %v769_v0 }
  0x81   :  { %577 = vmatprep.subr.bf16.mxu1 %v769_v0 }
  0x83   :  { %555 = vmatpush3.bf16.msra.mxu0 %v554_v36 }
  0x84   :  { %579 = vmatpush3.bf16.msra.mxu1 %v578_v37  ;;  %556 = vmatprep.subr.bf16.mxu0 %v769_v0 }
  0x85   :  { %580 = vmatprep.subr.bf16.mxu1 %v769_v0 }
  0x87   :  { %558 = vmatpush3.bf16.msra.mxu0 %v557_v42 }
  0x88   :  { %582 = vmatpush3.bf16.msra.mxu1 %v581_v43  ;;  %559 = vmatprep.subr.bf16.mxu0 %v769_v0 }
  0x89   :  { %583 = vmatprep.subr.bf16.mxu1 %v769_v0 }
  0x8b   :  { %561 = vmatpush3.bf16.msra.mxu0 %v560_v48 }
  0x8c   :  { %585 = vmatpush3.bf16.msra.mxu1 %v584_v49  ;;  %586 = vmatprep.subr.bf16.mxu0 %v769_v0 }
  0x8e   :  { %466 = vmatmul.mubr.f32.vlgmr.msra.gmra.mrb[0].mxu0 %v119_v52 }
  0x8f   :  { %501 = vmatmul.mubr.f32.vlgmr.msra.gmra.mrb[0].mxu1 %v102_v54  ;;  %588 = vmatpush3.bf16.msra.mxu0 %v587_v53 }
  0x90   :  { %589 = vmatprep.subr.bf16.mxu0 %v769_v0  ;;  %535 = vmatprep.mubr.msk.f32.mxu0 %vm770_vm0, %v771_v1  ;;  %v602_v1 = vpack.c.bf16 %v288_v6, %v287_v5 }
  0x93   :  { %591 = vmatpush3.bf16.msra.mxu0 %v590_v57 }
  0x94   :  { %592 = vmatprep.subr.bf16.mxu0 %v769_v0 }
  0x97   :  { %594 = vmatpush3.bf16.msra.mxu0 %v593_v60 }
  0x98   :  { %595 = vmatprep.subr.bf16.mxu0 %v769_v0 }
  0x9b   :  { %597 = vmatpush3.bf16.msra.mxu0 %v596_v63 }
  0x9c   :  { %598 = vmatprep.subr.bf16.mxu0 %v769_v0 }
  0x9f   :  { %600 = vmatpush3.bf16.msra.mxu0 %v599_v4 }
  0xa0   :  { %601 = vmatprep.subr.bf16.mxu0 %v769_v0 }
  0xa3   :  { %603 = vmatpush3.bf16.msra.mxu0 %v602_v1 }
  0xa4   :  { %604 = vmatprep.subr.bf16.mxu0 %v769_v0 }
  0xa7   :  { %606 = vmatpush3.bf16.msra.mxu0 %v605_v9 }
  0xa8   :  { %607 = vmatprep.subr.bf16.mxu0 %v769_v0 }
  0xab   :  { %609 = vmatpush3.bf16.msra.mxu0 %v608_v12 }
  0xae   :  { %536 = vmatmul.mubr.f32.vlgmr.msra.gmra.mrb[2].mxu0 %v276_v13 }
 0x161   :  { %v202_v14 = vpop.f32.mrb[0].mxu0 }
 0x162   :  { %v467_v15 = vpop.f32.mrb[1].mxu0  ;;  %v272_v16 = vpop.f32.mrb[0].mxu1 }
 0x163   :  { %v273_v17 = vadd.f32 %v272_v16, %v202_v14  ;;  %v502_v18 = vpop.f32.mrb[1].mxu1 }
 0x181   :  { %v359_v19 = vpop.f32.mrb[2].mxu0 }
 0x182   :  { %v363_v21 = vadd.f32 %v359_v19, %v273_v17  ;;  %v537_v22 = vpop.f32.mrb[3].mxu0 }
 0x184   :  { %v371_v23 = vadd.f32 %v381_v20, %v363_v21 }
 0x186   :  { %372 = vst [vmem:[%s950_s7] sm:$0xff] %v371_v23 }
 0x187   :  { %377 = vsyncpa [#allocation3], 1 }
 0x188   :  { %378 = vsyncpa [#allocation5], 1 }
 0x189   :  { %379 = vsyncpa [#allocation8], 1 }
 0x18a   :  { %380 = vsyncpa [#allocation11], 1 }

</bundles_post_ra>
